<compile_context>
chip_gen: v7x
topology: tpu7x:2x2x1
jax: 0.10.0
libtpu: 0.0.40
codegen_flags: <defaults>
</compile_context>

<pallas_src>
import functools

import numpy as np
import jax
import jax.numpy as jnp
from jax.experimental import pallas as pl
from jax.experimental.pallas import tpu as pltpu

try:  # optional; pure-numpy fallback below is exact too
    from scipy.optimize import linear_sum_assignment as _scipy_lsa
    _HAVE_SCIPY = True
except Exception:  # pragma: no cover
    _scipy_lsa = None
    _HAVE_SCIPY = False


# --------------------------------------------------------------------------- #
# Pallas kernel: pairwise matching cost, blocks of [TB, Tp (sublane), TQ (lane)] #
# --------------------------------------------------------------------------- #
def _pose_cost_kernel(tgt_ref, pred_ref, cost_ref, *, w_bbox, w_class, folded):
    tgt = tgt_ref[...]          # [TB, Tp, 8]  cols 0,1,2 = (wb*)cx, (wb*)cy, label
    prd = pred_ref[...]         # [TB, 8, TQ]  rows 0,1,2 = (wb*)cx, (wb*)cy, label

    tcx, tcy, tcl = tgt[:, :, 0:1], tgt[:, :, 1:2], tgt[:, :, 2:3]   # [TB, Tp, 1]
    pcx, pcy, pcl = prd[:, 0:1, :], prd[:, 1:2, :], prd[:, 2:3, :]   # [TB, 1, TQ]

    l1 = jnp.abs(tcx - pcx) + jnp.abs(tcy - pcy)                     # [TB, Tp, TQ]
    if not folded:              # exactness fallback for w_bbox < 0 (not folded host-side)
        l1 = l1 * jnp.float32(w_bbox)
    cls = jnp.where(tcl == pcl, jnp.float32(0.0), jnp.float32(w_class))
    cost_ref[...] = l1 + cls


# --------------------------------------------------------------------------- #
# Tiling helpers                                                              #
# --------------------------------------------------------------------------- #
def _round_up(x, m):
    return ((x + m - 1) // m) * m


def _vmem_capacity_bytes():
    try:
        return int(pltpu.get_tpu_info().vmem_capacity_bytes)
    except Exception:  # pragma: no cover - fall back to the most conservative size
        return 64 << 20


def _largest_dividing_tile(Qp, upper_lanes):
    """Largest multiple of 128 that divides Qp and is <= max(upper_lanes, 128)."""
    tq = min(Qp, max(128, (upper_lanes // 128) * 128))
    while Qp % tq:
        tq -= 128
    return tq


def _choose_tiling(bs, Tp, Qp):
    """Pick (TB, TQ, raise_vmem) for (TB, Tp, TQ) f32 output blocks on a 2-D grid."""
    vmem = _vmem_capacity_bytes()
    # <=2 MiB blocks on small-VMEM parts (v7x: 64 MiB), 4 MiB on v5e/v6e (128 MiB).
    cap = (4 << 20) if vmem >= (96 << 20) else (2 << 20)
    total = bs * Tp * Qp * 4
    if total <= (1 << 20):
        # whole problem is tiny: a single grid step beats any megacore split
        return bs, Qp, False
    TB = bs if bs * Tp * 128 * 4 <= cap else 1
    TQ = _largest_dividing_tile(Qp, cap // (4 * TB * Tp))
    if TB == bs and TQ == Qp:
        # non-trivial block but only one grid step: split so both v7x TCs get work
        if Qp >= 256:
            TQ = _largest_dividing_tile(Qp, Qp // 2)
        elif bs >= 2 and bs % 2 == 0:
            TB = bs // 2
    raise_vmem = cap > (2 << 20)
    return TB, TQ, raise_vmem


# --------------------------------------------------------------------------- #
# Jitted device path: pack preds -> pallas_call -> slice padding              #
# --------------------------------------------------------------------------- #
@functools.partial(
    jax.jit,
    static_argnames=("Q", "Qp", "Tp", "TB", "TQ", "maxT",
                     "w_bbox", "w_class", "folded", "raise_vmem"))
def _pairwise_cost_device(pred_boxes, pred_classes, tgt_packed, *,
                          Q, Qp, Tp, TB, TQ, maxT,
                          w_bbox, w_class, folded, raise_vmem):
    bs = tgt_packed.shape[0]

    # pack predictions: rows 0,1 = (w_bbox*)cx, (w_bbox*)cy ; row 2 = class
    cx = pred_boxes[..., 0].astype(jnp.float32)
    cy = pred_boxes[..., 1].astype(jnp.float32)
    if folded:
        cx = cx * w_bbox
        cy = cy * w_bbox
    cls = pred_classes[..., 0].astype(jnp.float32)
    pred_packed = jnp.stack([cx, cy, cls], axis=1)                      # [bs, 3, Q]
    pred_packed = jnp.pad(pred_packed, ((0, 0), (0, 5), (0, Qp - Q)),
                          constant_values=-1.0)                         # [bs, 8, Qp]

    kernel = functools.partial(_pose_cost_kernel, w_bbox=float(w_bbox),
                               w_class=float(w_class), folded=folded)
    grid = (bs // TB, Qp // TQ)
    out_bytes = bs * Tp * Qp * 4
    in_bytes = bs * Tp * 8 * 4 * grid[1] + bs * 8 * Qp * 4

    cost = pl.pallas_call(
        kernel,
        out_shape=jax.ShapeDtypeStruct((bs, Tp, Qp), jnp.float32),
        grid=grid,
        in_specs=[
            pl.BlockSpec((TB, Tp, 8), lambda b, q: (b, 0, 0)),
            pl.BlockSpec((TB, 8, TQ), lambda b, q: (b, 0, q)),
        ],
        out_specs=pl.BlockSpec((TB, Tp, TQ), lambda b, q: (b, 0, q)),
        compiler_params=pltpu.CompilerParams(
            dimension_semantics=("parallel", "parallel"),
            vmem_limit_bytes=(32 << 20) if raise_vmem else None),
        cost_estimate=pl.CostEstimate(
            flops=6 * bs * Tp * Qp,
            transcendentals=0,
            bytes_accessed=out_bytes + in_bytes),
    )(tgt_packed, pred_packed)

    # slice off padding on device before the (single) D2H transfer
    return cost[:, :maxT, :Q]


# --------------------------------------------------------------------------- #
# Host-side packing / wrapper                                                 #
# --------------------------------------------------------------------------- #
def _pack_targets_host(tgt_boxes_np, tgt_labels_np, Tp, w_bbox, folded):
    bs = len(tgt_boxes_np)
    packed = np.zeros((bs, Tp, 8), np.float32)
    packed[:, :, 2] = -2.0          # padded-target class sentinel (never matches)
    scale = float(w_bbox) if folded else 1.0
    for b in range(bs):
        n = tgt_boxes_np[b].shape[0]
        if n:
            packed[b, :n, 0] = tgt_boxes_np[b][:, 0] * scale
            packed[b, :n, 1] = tgt_boxes_np[b][:, 1] * scale
            packed[b, :n, 2] = tgt_labels_np[b]
    return packed


def _prepare_and_run(pred_boxes, pred_classes, tgt_boxes_np, tgt_labels_np,
                     cost_bbox, cost_class):
    bs, Q = int(pred_boxes.shape[0]), int(pred_boxes.shape[1])
    sizes = [int(b.shape[0]) for b in tgt_boxes_np]
    maxT = max(sizes) if sizes else 0
    maxT_eff = max(maxT, 1)
    Tp = _round_up(max(maxT, 8), 8)
    Qp = _round_up(max(Q, 128), 128)
    TB, TQ, raise_vmem = _choose_tiling(bs, Tp, Qp)

    folded = float(cost_bbox) >= 0.0
    tgt_packed = jnp.asarray(
        _pack_targets_host(tgt_boxes_np, tgt_labels_np, Tp, cost_bbox, folded))

    C = _pairwise_cost_device(
        pred_boxes, pred_classes, tgt_packed,
        Q=Q, Qp=Qp, Tp=Tp, TB=TB, TQ=TQ, maxT=maxT_eff,
        w_bbox=float(cost_bbox), w_class=float(cost_class),
        folded=folded, raise_vmem=raise_vmem)
    return C, sizes


def compute_pairwise_cost(pred_boxes, pred_classes, targets,
                          cost_bbox=1.0, cost_class=1.0):
    """pred_boxes [bs,Q,4], pred_classes [bs,Q,1], targets: list of dicts.

    Returns cost [bs, max(maxT,1), Q] (f32): rows = targets (sublanes),
    cols = queries (lanes).  Only [b, :T_b, :Q] is meaningful per image b.
    """
    targets_np = jax.device_get(targets)   # one batched transfer for the whole list
    tgt_boxes_np = [np.asarray(t['boxes'], np.float32).reshape(-1, 4) for t in targets_np]
    tgt_labels_np = [np.asarray(t['labels'], np.float32).reshape(-1) for t in targets_np]
    C, _ = _prepare_and_run(pred_boxes, pred_classes, tgt_boxes_np, tgt_labels_np,
                            cost_bbox, cost_class)
    return C


# --------------------------------------------------------------------------- #
# Host-side glue: Hungarian assignment + matched-pair GIoU / class filtering  #
# --------------------------------------------------------------------------- #
def _hungarian_rect(cost):
    """Exact min-cost assignment for rows <= cols (O(n^2 m), potentials)."""
    cost = np.asarray(cost, dtype=np.float64)
    n, m = cost.shape
    INF = np.inf
    u = np.zeros(n + 1)
    v = np.zeros(m + 1)
    p = np.zeros(m + 1, dtype=np.int64)
    way = np.zeros(m + 1, dtype=np.int64)
    for i in range(1, n + 1):
        p[0] = i
        j0 = 0
        minv = np.full(m + 1, INF)
        used = np.zeros(m + 1, dtype=bool)
        while True:
            used[j0] = True
            i0 = p[j0]
            delta = INF
            j1 = 0
            row = cost[i0 - 1]
            for j in range(1, m + 1):
                if not used[j]:
                    cur = row[j - 1] - u[i0] - v[j]
                    if cur < minv[j]:
                        minv[j] = cur
                        way[j] = j0
                    if minv[j] < delta:
                        delta = minv[j]
                        j1 = j
            for j in range(m + 1):
                if used[j]:
                    u[p[j]] += delta
                    v[j] -= delta
                else:
                    minv[j] -= delta
            j0 = j1
            if p[j0] == 0:
                break
        while True:
            j1 = way[j0]
            p[j0] = p[j1]
            j0 = j1
            if j0 == 0:
                break
    rows, cols = [], []
    for j in range(1, m + 1):
        if p[j] != 0:
            rows.append(p[j] - 1)
            cols.append(j - 1)
    rows = np.asarray(rows, dtype=np.int64)
    cols = np.asarray(cols, dtype=np.int64)
    order = np.argsort(rows)
    return rows[order], cols[order]


def _linear_sum_assignment(cost):
    # TODO(synk): Hungarian assignment (sequential augmenting paths) has no
    # clean Pallas/TPU equivalent; solved host-side on the kernel-produced cost.
    cost = np.asarray(cost, dtype=np.float64)
    r, c = cost.shape
    if r == 0 or c == 0:
        return np.array([], dtype=np.int64), np.array([], dtype=np.int64)
    if _HAVE_SCIPY:
        ri, ci = _scipy_lsa(cost)
        return ri.astype(np.int64), ci.astype(np.int64)
    if r <= c:
        return _hungarian_rect(cost)
    ci, ri = _hungarian_rect(cost.T)
    order = np.argsort(ri)
    return ri[order].astype(np.int64), ci[order].astype(np.int64)


def _giou_pairs_np(pb, tb, eps=1e-9):
    """Elementwise GIoU of matched (pred, target) cxcywh box pairs."""
    pb = np.asarray(pb, np.float64).reshape(-1, 4)
    tb = np.asarray(tb, np.float64).reshape(-1, 4)
    px0, px1 = pb[:, 0] - pb[:, 2] / 2, pb[:, 0] + pb[:, 2] / 2
    py0, py1 = pb[:, 1] - pb[:, 3] / 2, pb[:, 1] + pb[:, 3] / 2
    tx0, tx1 = tb[:, 0] - tb[:, 2] / 2, tb[:, 0] + tb[:, 2] / 2
    ty0, ty1 = tb[:, 1] - tb[:, 3] / 2, tb[:, 1] + tb[:, 3] / 2
    area_p = (px1 - px0) * (py1 - py0)
    area_t = (tx1 - tx0) * (ty1 - ty0)
    iw = np.clip(np.minimum(px1, tx1) - np.maximum(px0, tx0), 0, None)
    ih = np.clip(np.minimum(py1, ty1) - np.maximum(py0, ty0), 0, None)
    inter = iw * ih
    union = area_p + area_t - inter
    iou = inter / np.maximum(union, eps)
    ew = np.maximum(px1, tx1) - np.minimum(px0, tx0)
    eh = np.maximum(py1, ty1) - np.minimum(py0, ty0)
    enc = ew * eh
    return iou - (enc - union) / np.maximum(enc, eps)


class PoseMatcherPallas:
    def __init__(self, cost_bbox=1.0, cost_class=1.0,
                 bbox_mode='backbone', class_mode='specific'):
        self.cost_bbox = cost_bbox
        self.cost_class = cost_class
        self.bbox_mode = bbox_mode
        self.class_mode = class_mode
        if bbox_mode != 'backbone':
            # TODO(synk): 'gt' / 'jitter' cost variants not wired up (default path only).
            raise NotImplementedError("only bbox_mode='backbone' is implemented")

    def __call__(self, outputs, targets, n_boxes, giou_thresh=0.5):
        pred_boxes = outputs['pred_boxes']          # [bs, Q, 4]
        pred_classes = outputs['pred_classes']      # [bs, Q, 1]
        bs, Q = int(pred_boxes.shape[0]), int(pred_boxes.shape[1])

        # ONE batched transfer for the whole target list; reuse numpy below.
        targets_np = jax.device_get(targets)
        tgt_boxes_np = [np.asarray(t['boxes'], np.float32).reshape(-1, 4)
                        for t in targets_np]
        tgt_labels_np = [np.asarray(t['labels'], np.float32).reshape(-1)
                         for t in targets_np]

        # --- hot path on TPU: per-image [T, Q] cost blocks only ---
        C, sizes = _prepare_and_run(pred_boxes, pred_classes, tgt_boxes_np,
                                    tgt_labels_np, self.cost_bbox, self.cost_class)

        # ONE batched D2H for everything the host-side assignment needs.
        C_np, pred_boxes_np, pred_cls_np = jax.device_get((C, pred_boxes, pred_classes))
        C_np = np.asarray(C_np, np.float32)
        pred_boxes_np = np.asarray(pred_boxes_np, np.float32)
        pred_cls_np = np.asarray(pred_cls_np, np.float32).reshape(bs, Q)

        # --- Hungarian assignment per image ---
        indices = []
        for b in range(bs):
            Tb, nb = sizes[b], int(n_boxes[b])
            if Tb == 0 or nb == 0:
                indices.append((np.array([], np.int64), np.array([], np.int64)))
                continue
            c_b = C_np[b, :Tb, :nb].T          # [n_boxes_b, T_b] (queries x targets)
            indices.append(_linear_sum_assignment(c_b))

        # --- backbone mode: filter matched pairs by class agreement + GIoU ---
        new_indices = []
        for b in range(bs):
            tgt_box_np = tgt_boxes_np[b]
            tgt_cls_np = tgt_labels_np[b]
            src_idx, tgt_idx = indices[b]
            new_src, new_tgt = [], []
            if len(src_idx):
                gious = _giou_pairs_np(pred_boxes_np[b, src_idx], tgt_box_np[tgt_idx])
                for k, (i, j) in enumerate(zip(src_idx, tgt_idx)):
                    if (self.class_mode == 'specific'
                            and float(pred_cls_np[b, i]) != float(tgt_cls_np[j])):
                        continue
                    if gious[k] < giou_thresh:
                        continue
                    new_src.append(int(i))
                    new_tgt.append(int(j))
            new_indices.append((np.asarray(new_src, dtype=np.int64),
                                np.asarray(new_tgt, dtype=np.int64)))
        return new_indices


# --------------------------------------------------------------------------- #
# Pure-numpy reference for the kernel-computed per-image cost block           #
# --------------------------------------------------------------------------- #
def _ref_cost_block(pb, pc, tb, tc, wb, wc):
    pb = np.asarray(pb, np.float32).reshape(-1, 4)
    pc = np.asarray(pc, np.float32).reshape(-1)
    tb = np.asarray(tb, np.float32).reshape(-1, 4)
    tc = np.asarray(tc, np.float32).reshape(-1)
    l1 = (np.abs(pb[:, None, 0] - tb[None, :, 0]) +
          np.abs(pb[:, None, 1] - tb[None, :, 1]))
    mism = (pc[:, None] != tc[None, :]).astype(np.float32)
    return wb * l1 + wc * mism      # [Q, T_b]


# --------------------------------------------------------------------------- #
if __name__ == "__main__":
    key = jax.random.PRNGKey(0)
    bs, num_queries = 2, 8
    sizes = [3, 2]
    n_boxes = [8, 8]
    n_classes = 4

    keys = jax.random.split(key, 8)

    targets = []
    for b in range(bs):
        kb, kw, kl = jax.random.split(keys[b], 3)
        cxcy = jax.random.uniform(kb, (sizes[b], 2), minval=0.25, maxval=0.75)
        wh = jax.random.uniform(kw, (sizes[b], 2), minval=0.15, maxval=0.35)
        boxes = jnp.concatenate([cxcy, wh], axis=-1)
        labels = jax.random.randint(kl, (sizes[b],), 0, n_classes)
        targets.append({'boxes': boxes, 'labels': labels})

    pred_boxes = jax.random.uniform(keys[4], (bs, num_queries, 4),
                                    minval=0.1, maxval=0.5)
    pred_classes = jax.random.randint(keys[5], (bs, num_queries, 1),
                                      0, n_classes).astype(jnp.float32)
    # plant a few near-matches so the GIoU/class filter keeps some pairs
    for b in range(bs):
        nb = sizes[b]
        jit = 0.02 * jax.random.normal(jax.random.fold_in(keys[6], b), (nb, 4))
        pred_boxes = pred_boxes.at[b, :nb].set(targets[b]['boxes'] + jit)
        pred_classes = pred_classes.at[b, :nb, 0].set(
            targets[b]['labels'].astype(jnp.float32))

    outputs = {'pred_boxes': pred_boxes, 'pred_classes': pred_classes}

    # ---- run the Pallas kernel and check against the numpy reference ----
    # (covers folded w_bbox >= 0 and the non-folded w_bbox < 0 branch)
    for wb, wc in ((1.0, 1.0), (2.5, 0.75), (-0.5, 1.25)):
        C = compute_pairwise_cost(pred_boxes, pred_classes, targets, wb, wc)
        C = jax.block_until_ready(C)
        C_np = np.asarray(jax.device_get(C))
        for b in range(bs):
            ref = _ref_cost_block(pred_boxes[b], pred_classes[b],
                                  targets[b]['boxes'], targets[b]['labels'], wb, wc)
            got = C_np[b, :sizes[b], :num_queries].T     # [Q, T_b]
            np.testing.assert_allclose(got, ref, rtol=1e-5, atol=1e-5)

    # ---- exercise the multi-block 2-D grid path (TB=1, TQ=128 -> grid (2,2)) ----
    Q2 = 192
    k_pb2, k_pc2 = jax.random.split(keys[7])
    pb2 = jax.random.uniform(k_pb2, (bs, Q2, 4), minval=0.0, maxval=1.0)
    pc2 = jax.random.randint(k_pc2, (bs, Q2, 1), 0, n_classes).astype(jnp.float32)
    targets_np = jax.device_get(targets)
    tgt_boxes_np = [np.asarray(t['boxes'], np.float32).reshape(-1, 4) for t in targets_np]
    tgt_labels_np = [np.asarray(t['labels'], np.float32).reshape(-1) for t in targets_np]
    Tp2 = _round_up(max(max(sizes), 8), 8)
    Qp2 = _round_up(max(Q2, 128), 128)
    tgt_packed2 = jnp.asarray(
        _pack_targets_host(tgt_boxes_np, tgt_labels_np, Tp2, 1.0, True))
    C2 = _pairwise_cost_device(
        pb2, pc2, tgt_packed2,
        Q=Q2, Qp=Qp2, Tp=Tp2, TB=1, TQ=128, maxT=max(sizes),
        w_bbox=1.0, w_class=1.0, folded=True, raise_vmem=False)
    C2 = jax.block_until_ready(C2)
    C2_np = np.asarray(jax.device_get(C2))
    for b in range(bs):
        ref = _ref_cost_block(pb2[b], pc2[b], targets[b]['boxes'],
                              targets[b]['labels'], 1.0, 1.0)
        np.testing.assert_allclose(C2_np[b, :sizes[b], :Q2].T, ref,
                                   rtol=1e-5, atol=1e-5)

    # ---- full matcher (kernel + host-side assignment/filtering) ----
    matcher = PoseMatcherPallas(cost_bbox=1.0, cost_class=1.0,
                                bbox_mode='backbone', class_mode='specific')
    indices = matcher(outputs, targets, n_boxes, giou_thresh=0.5)
    assert len(indices) == bs
    for i_idx, j_idx in indices:
        assert i_idx.dtype == np.int64 and j_idx.dtype == np.int64
        assert len(i_idx) == len(j_idx)

    print("KERNEL_OK")
</pallas_src>

<mosaic_0001>
module attributes {stable_mosaic.version = 11 : i64} {
  func.func @_pose_cost_kernel(%arg0: i32, %arg1: i32, %arg2: memref<2x8x8xf32, #tpu.memory_space<vmem>>, %arg3: memref<2x8x128xf32, #tpu.memory_space<vmem>>, %arg4: memref<2x8x128xf32, #tpu.memory_space<vmem>>) attributes {dimension_semantics = [#tpu.dimension_semantics<parallel>, #tpu.dimension_semantics<parallel>], iteration_bounds = array<i64: 1, 1>, scalar_prefetch = 0 : i64, scratch_operands = 0 : i64, tpu.core_type = #tpu.core_type<tc>, window_params = [{transform_indices = @transform_0, window_bounds = array<i64: 2, 8, 8>}, {transform_indices = @transform_1, window_bounds = array<i64: 2, 8, 128>}, {transform_indices = @transform_2, window_bounds = array<i64: 2, 8, 128>}]} {
    %c0 = arith.constant 0 : index
    %c0_0 = arith.constant 0 : index
    %c0_1 = arith.constant 0 : index
    %0 = vector.load %arg2[%c0, %c0_0, %c0_1] : memref<2x8x8xf32, #tpu.memory_space<vmem>>, vector<2x8x8xf32>
    %c0_2 = arith.constant 0 : index
    %c0_3 = arith.constant 0 : index
    %c0_4 = arith.constant 0 : index
    %1 = vector.load %arg3[%c0_2, %c0_3, %c0_4] : memref<2x8x128xf32, #tpu.memory_space<vmem>>, vector<2x8x128xf32>
    %2 = vector.extract_strided_slice %0 {offsets = [0, 0, 0], sizes = [2, 8, 1], strides = [1, 1, 1]} : vector<2x8x8xf32> to vector<2x8x1xf32>
    %3 = vector.extract_strided_slice %0 {offsets = [0, 0, 1], sizes = [2, 8, 1], strides = [1, 1, 1]} : vector<2x8x8xf32> to vector<2x8x1xf32>
    %4 = vector.extract_strided_slice %0 {offsets = [0, 0, 2], sizes = [2, 8, 1], strides = [1, 1, 1]} : vector<2x8x8xf32> to vector<2x8x1xf32>
    %5 = vector.extract_strided_slice %1 {offsets = [0, 0, 0], sizes = [2, 1, 128], strides = [1, 1, 1]} : vector<2x8x128xf32> to vector<2x1x128xf32>
    %6 = vector.extract_strided_slice %1 {offsets = [0, 1, 0], sizes = [2, 1, 128], strides = [1, 1, 1]} : vector<2x8x128xf32> to vector<2x1x128xf32>
    %7 = vector.extract_strided_slice %1 {offsets = [0, 2, 0], sizes = [2, 1, 128], strides = [1, 1, 1]} : vector<2x8x128xf32> to vector<2x1x128xf32>
    %8 = vector.broadcast %2 : vector<2x8x1xf32> to vector<2x8x128xf32>
    %9 = vector.broadcast %5 : vector<2x1x128xf32> to vector<2x8x128xf32>
    %10 = arith.subf %8, %9 : vector<2x8x128xf32>
    %11 = math.absf %10 : vector<2x8x128xf32>
    %12 = vector.broadcast %3 : vector<2x8x1xf32> to vector<2x8x128xf32>
    %13 = vector.broadcast %6 : vector<2x1x128xf32> to vector<2x8x128xf32>
    %14 = arith.subf %12, %13 : vector<2x8x128xf32>
    %15 = math.absf %14 : vector<2x8x128xf32>
    %16 = arith.addf %11, %15 : vector<2x8x128xf32>
    %17 = vector.broadcast %4 : vector<2x8x1xf32> to vector<2x8x128xf32>
    %18 = vector.broadcast %7 : vector<2x1x128xf32> to vector<2x8x128xf32>
    %19 = arith.cmpf oeq, %17, %18 : vector<2x8x128xf32>
    %cst = arith.constant 0.000000e+00 : f32
    %cst_5 = arith.constant 1.000000e+00 : f32
    %20 = vector.broadcast %cst : f32 to vector<2x8x128xf32>
    %21 = vector.broadcast %cst_5 : f32 to vector<2x8x128xf32>
    %22 = arith.select %19, %20, %21 : vector<2x8x128xi1>, vector<2x8x128xf32>
    %23 = arith.addf %16, %22 : vector<2x8x128xf32>
    %c0_6 = arith.constant 0 : index
    %c0_7 = arith.constant 0 : index
    %c0_8 = arith.constant 0 : index
    %24 = vector.load %arg4[%c0_6, %c0_7, %c0_8] : memref<2x8x128xf32, #tpu.memory_space<vmem>>, vector<2x8x128xf32>
    tpu.vector_store %arg4[%c0_6, %c0_7, %c0_8], %23 {strides = array<i32>} : memref<2x8x128xf32, #tpu.memory_space<vmem>>, vector<2x8x128xf32>,
    return
  }
  func.func @transform_0(%arg0: i32, %arg1: i32) -> (i32, i32, i32) {
    %c0_i32 = arith.constant 0 : i32
    %c0_i32_0 = arith.constant 0 : i32
    %c0_i32_1 = arith.constant 0 : i32
    return %arg0, %c0_i32, %c0_i32_0 : i32, i32, i32
  }
  func.func @transform_1(%arg0: i32, %arg1: i32) -> (i32, i32, i32) {
    %c0_i32 = arith.constant 0 : i32
    %c0_i32_0 = arith.constant 0 : i32
    return %arg0, %c0_i32, %arg1 : i32, i32, i32
  }
  func.func @transform_2(%arg0: i32, %arg1: i32) -> (i32, i32, i32) {
    %c0_i32 = arith.constant 0 : i32
    %c0_i32_0 = arith.constant 0 : i32
    return %arg0, %c0_i32, %arg1 : i32, i32, i32
  }
}

</mosaic_0001>

<bundles_post_ra>
// kernel: _pairwise_cost_device.1
= control target key start
LH: loop header
LB: loop body
LE: loop exit
PB: predicated region body
PF: predicated region fallthrough
CT: control target
= control target key end

     0   :  { %v95_v0 = vmov 1   ;;  %v96_v1 = vmov 0   ;;  %v97_v4 = vmov 2   ;;  %v25_v5 = vlaneseq  ;;  %s132_s0 = inlined_call_operand.vmem [shape: f32[2,8,8], index: 0, kind: input, shape index: {}]   ;;  %s133_s1 = inlined_call_operand.vmem [shape: f32[2,8,128], index: 1, kind: input, shape index: {}]   ;;  %s134_s2 = inlined_call_operand.vmem [shape: f32[2,8,128], index: 2, kind: output, shape index: {}]  }
   0x1   :  { %92 = vset.pattern.permute.xlu1 %v95_v0  ;;  %91 = vset.pattern.permute.xlu0 %v96_v1  ;;  %v11_v2 = vld [vmem:[%s132_s0] sm:$0xff]  ;;  %v12_v3 = vld [vmem:[%s132_s0 + $0x8] sm:$0xff]  ;;  %v98_v34 = vmov 1.0  }
   0x2   :  { %38 = vperm.xlu1 %92, %v11_v2   ;;  %17 = vperm.xlu0 %91, %v11_v2   ;;  %v26_v6 = vshrl.u32 %v25_v5, 7  ;;  %v13_v9 = vld [vmem:[%s133_s1] sm:$0xff]  ;;  %v14_v12 = vld [vmem:[%s133_s1 + $0x8] sm:$0xff] }
   0x4   :  { %v47_v7 = vsub.s32 1, %v26_v6  ;;  %v27_v8 = vsub.s32 0, %v26_v6  ;;  %v69_v19 = vsub.s32 2, %v26_v6 }
   0x6   :  { %42 = vperm.xlu1 %92, %v12_v3   ;;  %22 = vperm.xlu0 %91, %v12_v3   ;;  %v48_v10 = vrot.slane %v13_v9, %v47_v7  ;;  %v28_v11 = vrot.slane %v13_v9, %v27_v8  ;;  %v52_v15 = vrot.slane %v14_v12, %v47_v7 }
   0x7   :  { %v32_v16 = vrot.slane %v14_v12, %v27_v8  ;;  %v74_v26 = vrot.slane %v14_v12, %v69_v19  ;;  %v70_v27 = vrot.slane %v13_v9, %v69_v19 }
   0xa   :  { %94 = vset.pattern.permute.xlu1 %v97_v4  ;;  %93 = vset.pattern.permute.xlu0 %v97_v4 }
   0xb   :  { %64 = vperm.xlu1 %94, %v12_v3   ;;  %60 = vperm.xlu0 %93, %v11_v2  }
  0x81   :  { %v39_v13 = vpop.permute.xlu1 %38  ;;  %v18_v14 = vpop.permute.xlu0 %17 }
  0x82   :  { %v53_v17 = vsub.f32 %v39_v13, %v48_v10  ;;  %v33_v18 = vsub.f32 %v18_v14, %v28_v11 }
  0x84   :  { %v55_v24 = vand.u32 2147483647, %v53_v17  ;;  %v35_v25 = vand.u32 2147483647, %v33_v18 }
  0x85   :  { %v43_v20 = vpop.permute.xlu1 %42  ;;  %v23_v21 = vpop.permute.xlu0 %22 }
  0x86   :  { %v54_v22 = vsub.f32 %v43_v20, %v52_v15  ;;  %v34_v23 = vsub.f32 %v23_v21, %v32_v16  ;;  %v57_v33 = vadd.f32 %v55_v24, %v35_v25 }
  0x88   :  { %v56_v28 = vand.u32 2147483647, %v54_v22  ;;  %v36_v29 = vand.u32 2147483647, %v34_v23 }
  0x8a   :  { %v58_v30 = vadd.f32 %v56_v28, %v36_v29  ;;  %v65_v31 = vpop.permute.xlu1 %64  ;;  %v61_v32 = vpop.permute.xlu0 %60 }
  0x8b   :  { %vm76_vm0 = vcmp.eq.f32.partialorder %v65_v31, %v74_v26  ;;  %vm75_vm1 = vcmp.eq.f32.partialorder %v61_v32, %v70_v27 }
  0x8c   :  { %v78_v35 = vsel %vm76_vm0, 0.0, %v98_v34  ;;  %v77_v36 = vsel %vm75_vm1, 0.0, %v98_v34 }
  0x8d   :  { %v80_v37 = vadd.f32 %v78_v35, %v58_v30  ;;  %v79_v38 = vadd.f32 %v77_v36, %v57_v33 }
  0x8f   :  { %82 = vst [vmem:[%s134_s2 + $0x8] sm:$0xff] %v80_v37  ;;  %81 = vst [vmem:[%s134_s2] sm:$0xff] %v79_v38 }

</bundles_post_ra>
